<compile_context>
chip_gen: v7x
topology: tpu7x:2x2x1
jax: 0.10.0
libtpu: 0.0.40
codegen_flags: <defaults>
</compile_context>

<pallas_src>
import functools

import jax
import jax.numpy as jnp
from jax.experimental import pallas as pl
from jax.experimental.pallas import tpu as pltpu

LOG_STD_MIN = -20.0
LOG_STD_MAX = 2.0


def _round_up(x, m):
    return (x + m - 1) // m * m


def _cdiv(a, b):
    return (a + b - 1) // b


def _policy_kernel(state_ref, w1_ref, b1_ref, w2_ref, b2_ref, wh_ref, bh_ref,
                   out_ref, *, action_size):
    # In-kernel bf16 cast of the state (hides under the MXU) instead of a
    # separate wrapper-side XLA pass over the activations.
    x = state_ref[...].astype(w1_ref.dtype)

    # hidden layer 1: relu(x @ W1 + b1)   (bf16 inputs, f32 accumulate)
    h1 = jnp.dot(x, w1_ref[...], preferred_element_type=jnp.float32) + b1_ref[...]
    h1 = jnp.maximum(h1, 0.0)

    # hidden layer 2: relu(h1 @ W2 + b2)
    h2 = jnp.dot(h1.astype(w2_ref.dtype), w2_ref[...],
                 preferred_element_type=jnp.float32) + b2_ref[...]
    h2 = jnp.maximum(h2, 0.0)

    # fused heads: [mean | log_std | pad] in one lane-dense matmul
    out = jnp.dot(h2.astype(wh_ref.dtype), wh_ref[...],
                  preferred_element_type=jnp.float32) + bh_ref[...]

    # Clamp only the log_std (and padded) columns with a single compare:
    # mean columns [0, A) untouched; padded columns >= 2A are zero (clamp is a
    # no-op on them) and are discarded by the wrapper anyway.
    col = jax.lax.broadcasted_iota(jnp.int32, out.shape, dimension=1)
    out = jnp.where(col >= action_size,
                    jnp.clip(out, LOG_STD_MIN, LOG_STD_MAX), out)

    out_ref[...] = out.astype(out_ref.dtype)


def prepare_params(params):
    """One-time layout prep (hoisted out of the per-call wrapper):
      * fuse mean / log_std heads into one weight/bias, padded to a 128-lane
        slab so the kernel writeback is unmasked & lane-dense,
      * cast matmul weights to bf16 (f32 accumulation happens in-kernel).
    Returns the tuple consumed by gaussian_policy_forward."""
    w1, b1, w2, b2, wm, bm, ws, bs = params
    A = wm.shape[1]
    OUT = _round_up(max(2 * A, 128), 128)
    wh = jnp.pad(jnp.concatenate([wm, ws], axis=1), ((0, 0), (0, OUT - 2 * A)))
    bh = jnp.pad(jnp.concatenate([bm, bs], axis=1), ((0, 0), (0, OUT - 2 * A)))
    return (w1.astype(jnp.bfloat16), b1,
            w2.astype(jnp.bfloat16), b2,
            wh.astype(jnp.bfloat16), bh)


def _pick_batch_tile(B, max_tb=2048):
    """Balanced batch tiles: >=2 grid steps for non-tiny B (so the 'parallel'
    axis shards across v7x's 2 TensorCores), capped at max_tb rows to amortize
    per-grid-step overhead, and sized from ceil(B / n_tiles) so ragged batch
    sizes waste at most a few padded rows."""
    if B < 16:
        return _round_up(max(B, 1), 8)     # too small to split usefully
    n_tiles = max(2, _cdiv(B, max_tb))
    return _round_up(_cdiv(B, n_tiles), 8)


def gaussian_policy_forward(state, prepared_params, action_size):
    """state: [B, state_size] f32; prepared_params from prepare_params().
    Returns (mean, log_std), each [B, action_size] f32."""
    w1b, b1, w2b, b2, whb, bh = prepared_params
    B, S = state.shape
    H1 = w1b.shape[1]
    H2 = w2b.shape[1]
    OUT = whb.shape[1]
    A = action_size

    TB = _pick_batch_tile(B)
    Bp = _round_up(B, TB)
    xs = state
    if Bp != B:
        # row padding is the only remaining wrapper-side pass over activations
        xs = jnp.pad(xs, ((0, Bp - B), (0, 0)))
    grid = (Bp // TB,)

    # Constant index_map keeps weights/biases VMEM-resident across grid steps.
    # (pl.Buffered(1) on these would halve their VMEM, but at H=256 resident
    #  weights are ~200 KB -- irrelevant on every generation, so skipped.)
    row_spec = lambda shape: pl.BlockSpec(shape, lambda i: (0, 0))
    kernel = functools.partial(_policy_kernel, action_size=A)

    out = pl.pallas_call(
        kernel,
        out_shape=jax.ShapeDtypeStruct((Bp, OUT), jnp.float32),
        grid=grid,
        in_specs=[
            pl.BlockSpec((TB, S), lambda i: (i, 0)),   # state rows (pipelined)
            row_spec((S, H1)),                         # w1  (resident)
            row_spec((1, H1)),                         # b1
            row_spec((H1, H2)),                        # w2
            row_spec((1, H2)),                         # b2
            row_spec((H2, OUT)),                       # fused head weights
            row_spec((1, OUT)),                        # fused head bias
        ],
        out_specs=pl.BlockSpec((TB, OUT), lambda i: (i, 0)),
        compiler_params=pltpu.CompilerParams(
            dimension_semantics=("parallel",)),
    )(xs, w1b, b1, w2b, b2, whb, bh)

    out = out[:B]
    mean = out[:, :A]
    log_std = out[:, A:2 * A]
    return mean, log_std


def init_params(key, state_size, action_size, layer1=256, layer2=256, init_w=0.003):
    """Deterministic init mirroring the PyTorch module's shapes/ranges.
    Weights are stored transposed: (in, out)."""
    ks = jax.random.split(key, 8)

    def uniform(k, shape, bound):
        return jax.random.uniform(k, shape, jnp.float32, -bound, bound)

    # nn.Linear default: U(-1/sqrt(fan_in), 1/sqrt(fan_in))
    b1_bound = 1.0 / float(state_size) ** 0.5
    b2_bound = 1.0 / float(layer1) ** 0.5

    w1 = uniform(ks[0], (state_size, layer1), b1_bound)
    b1 = uniform(ks[1], (1, layer1), b1_bound)
    w2 = uniform(ks[2], (layer1, layer2), b2_bound)
    b2 = uniform(ks[3], (1, layer2), b2_bound)
    # mean / log_std heads: U(-init_w, init_w) as in __init__
    wm = uniform(ks[4], (layer2, action_size), init_w)
    bm = uniform(ks[5], (1, action_size), init_w)
    ws = uniform(ks[6], (layer2, action_size), init_w)
    bs = uniform(ks[7], (1, action_size), init_w)
    return (w1, b1, w2, b2, wm, bm, ws, bs)


def reference_forward(state, params):
    w1, b1, w2, b2, wm, bm, ws, bs = params
    h1 = jax.nn.relu(state @ w1 + b1)
    h2 = jax.nn.relu(h1 @ w2 + b2)
    mean = h2 @ wm + bm
    log_std = jnp.clip(h2 @ ws + bs, LOG_STD_MIN, LOG_STD_MAX)
    return mean, log_std


# TODO(synk): the module's `sample()` (Normal.rsample + tanh log-prob correction)
# is not implemented here; only the forward pass is kernelized.

if __name__ == "__main__":
    key = jax.random.PRNGKey(0)
    k_param, k_state = jax.random.split(key)

    batch = 8
    state_size = 16
    action_size = 4

    params = init_params(k_param, state_size, action_size)
    prepared = prepare_params(params)          # one-time layout / dtype prep
    state = jax.random.normal(k_state, (batch, state_size), jnp.float32)

    mean, log_std = gaussian_policy_forward(state, prepared, action_size)
    jax.block_until_ready((mean, log_std))

    mean_ref, log_std_ref = reference_forward(state, params)
    assert mean.shape == (batch, action_size)
    assert log_std.shape == (batch, action_size)
    # bf16 weights/activations in the kernel vs f32 reference -> looser tolerance
    assert jnp.allclose(mean, mean_ref, atol=2e-2, rtol=2e-2)
    assert jnp.allclose(log_std, log_std_ref, atol=2e-2, rtol=2e-2)

    print("KERNEL_OK")
</pallas_src>

<mosaic_0001>
module attributes {stable_mosaic.version = 11 : i64} {
  func.func @_policy_kernel(%arg0: i32, %arg1: memref<8x16xf32, #tpu.memory_space<vmem>>, %arg2: memref<16x256xbf16, #tpu.memory_space<vmem>>, %arg3: memref<1x256xf32, #tpu.memory_space<vmem>>, %arg4: memref<256x256xbf16, #tpu.memory_space<vmem>>, %arg5: memref<1x256xf32, #tpu.memory_space<vmem>>, %arg6: memref<256x128xbf16, #tpu.memory_space<vmem>>, %arg7: memref<1x128xf32, #tpu.memory_space<vmem>>, %arg8: memref<8x128xf32, #tpu.memory_space<vmem>>) attributes {dimension_semantics = [#tpu.dimension_semantics<parallel>], iteration_bounds = array<i64: 1>, scalar_prefetch = 0 : i64, scratch_operands = 0 : i64, tpu.core_type = #tpu.core_type<tc>, window_params = [{transform_indices = @transform_0, window_bounds = array<i64: 8, 16>}, {pipeline_mode = #tpu.pipeline_mode<synchronous>, transform_indices = @transform_1, window_bounds = array<i64: 16, 256>}, {pipeline_mode = #tpu.pipeline_mode<synchronous>, transform_indices = @transform_2, window_bounds = array<i64: 1, 256>}, {pipeline_mode = #tpu.pipeline_mode<synchronous>, transform_indices = @transform_3, window_bounds = array<i64: 256, 256>}, {pipeline_mode = #tpu.pipeline_mode<synchronous>, transform_indices = @transform_4, window_bounds = array<i64: 1, 256>}, {pipeline_mode = #tpu.pipeline_mode<synchronous>, transform_indices = @transform_5, window_bounds = array<i64: 256, 128>}, {pipeline_mode = #tpu.pipeline_mode<synchronous>, transform_indices = @transform_6, window_bounds = array<i64: 1, 128>}, {transform_indices = @transform_7, window_bounds = array<i64: 8, 128>}]} {
    %c0 = arith.constant 0 : index
    %c0_0 = arith.constant 0 : index
    %0 = vector.load %arg1[%c0, %c0_0] : memref<8x16xf32, #tpu.memory_space<vmem>>, vector<8x16xf32>
    %1 = arith.truncf %0 : vector<8x16xf32> to vector<8x16xbf16>
    %c0_1 = arith.constant 0 : index
    %c0_2 = arith.constant 0 : index
    %2 = vector.load %arg2[%c0_1, %c0_2] : memref<16x256xbf16, #tpu.memory_space<vmem>>, vector<16x256xbf16>
    %cst = arith.constant dense<0.000000e+00> : vector<8x256xf32>
    %3 = tpu.matmul %1, %2, %cst {dimension_numbers = #tpu.dot_dimension_numbers<[1], [0], [0], [1], [0, 0, 1, 1], [], []>} : vector<8x16xbf16>, vector<16x256xbf16>, vector<8x256xf32> -> vector<8x256xf32>
    %c0_3 = arith.constant 0 : index
    %c0_4 = arith.constant 0 : index
    %4 = vector.load %arg3[%c0_3, %c0_4] : memref<1x256xf32, #tpu.memory_space<vmem>>, vector<1x256xf32>
    %5 = vector.broadcast %4 : vector<1x256xf32> to vector<8x256xf32>
    %6 = arith.addf %3, %5 : vector<8x256xf32>
    %cst_5 = arith.constant 0.000000e+00 : f32
    %7 = vector.broadcast %cst_5 : f32 to vector<8x256xf32>
    %8 = arith.maximumf %6, %7 : vector<8x256xf32>
    %9 = arith.truncf %8 : vector<8x256xf32> to vector<8x256xbf16>
    %c0_6 = arith.constant 0 : index
    %c0_7 = arith.constant 0 : index
    %10 = vector.load %arg4[%c0_6, %c0_7] : memref<256x256xbf16, #tpu.memory_space<vmem>>, vector<256x256xbf16>
    %cst_8 = arith.constant dense<0.000000e+00> : vector<8x256xf32>
    %11 = tpu.matmul %9, %10, %cst_8 {dimension_numbers = #tpu.dot_dimension_numbers<[1], [0], [0], [1], [0, 0, 1, 1], [], []>} : vector<8x256xbf16>, vector<256x256xbf16>, vector<8x256xf32> -> vector<8x256xf32>
    %c0_9 = arith.constant 0 : index
    %c0_10 = arith.constant 0 : index
    %12 = vector.load %arg5[%c0_9, %c0_10] : memref<1x256xf32, #tpu.memory_space<vmem>>, vector<1x256xf32>
    %13 = vector.broadcast %12 : vector<1x256xf32> to vector<8x256xf32>
    %14 = arith.addf %11, %13 : vector<8x256xf32>
    %cst_11 = arith.constant 0.000000e+00 : f32
    %15 = vector.broadcast %cst_11 : f32 to vector<8x256xf32>
    %16 = arith.maximumf %14, %15 : vector<8x256xf32>
    %17 = arith.truncf %16 : vector<8x256xf32> to vector<8x256xbf16>
    %c0_12 = arith.constant 0 : index
    %c0_13 = arith.constant 0 : index
    %18 = vector.load %arg6[%c0_12, %c0_13] : memref<256x128xbf16, #tpu.memory_space<vmem>>, vector<256x128xbf16>
    %cst_14 = arith.constant dense<0.000000e+00> : vector<8x128xf32>
    %19 = tpu.matmul %17, %18, %cst_14 {dimension_numbers = #tpu.dot_dimension_numbers<[1], [0], [0], [1], [0, 0, 1, 1], [], []>} : vector<8x256xbf16>, vector<256x128xbf16>, vector<8x128xf32> -> vector<8x128xf32>
    %c0_15 = arith.constant 0 : index
    %c0_16 = arith.constant 0 : index
    %20 = vector.load %arg7[%c0_15, %c0_16] : memref<1x128xf32, #tpu.memory_space<vmem>>, vector<1x128xf32>
    %21 = vector.broadcast %20 : vector<1x128xf32> to vector<8x128xf32>
    %22 = arith.addf %19, %21 : vector<8x128xf32>
    %23 = tpu.iota {dimensions = array<i32: 1>} : vector<8x128xi32>
    %c4_i32 = arith.constant 4 : i32
    %24 = vector.broadcast %c4_i32 : i32 to vector<8x128xi32>
    %25 = arith.cmpi sge, %23, %24 : vector<8x128xi32>
    %cst_17 = arith.constant -2.000000e+01 : f32
    %cst_18 = arith.constant 2.000000e+00 : f32
    %26 = vector.broadcast %cst_17 : f32 to vector<8x128xf32>
    %27 = arith.maximumf %26, %22 : vector<8x128xf32>
    %28 = vector.broadcast %cst_18 : f32 to vector<8x128xf32>
    %29 = arith.minimumf %28, %27 : vector<8x128xf32>
    %30 = arith.select %25, %29, %22 : vector<8x128xi1>, vector<8x128xf32>
    %c0_19 = arith.constant 0 : index
    %c0_20 = arith.constant 0 : index
    %31 = vector.load %arg8[%c0_19, %c0_20] : memref<8x128xf32, #tpu.memory_space<vmem>>, vector<8x128xf32>
    tpu.vector_store %arg8[%c0_19, %c0_20], %30 {strides = array<i32>} : memref<8x128xf32, #tpu.memory_space<vmem>>, vector<8x128xf32>,
    return
  }
  func.func @transform_0(%arg0: i32) -> (i32, i32) {
    %c0_i32 = arith.constant 0 : i32
    %c0_i32_0 = arith.constant 0 : i32
    return %arg0, %c0_i32 : i32, i32
  }
  func.func @transform_1(%arg0: i32) -> (i32, i32) {
    %c0_i32 = arith.constant 0 : i32
    %c0_i32_0 = arith.constant 0 : i32
    %c0_i32_1 = arith.constant 0 : i32
    return %c0_i32, %c0_i32_0 : i32, i32
  }
  func.func @transform_2(%arg0: i32) -> (i32, i32) {
    %c0_i32 = arith.constant 0 : i32
    %c0_i32_0 = arith.constant 0 : i32
    %c0_i32_1 = arith.constant 0 : i32
    return %c0_i32, %c0_i32_0 : i32, i32
  }
  func.func @transform_3(%arg0: i32) -> (i32, i32) {
    %c0_i32 = arith.constant 0 : i32
    %c0_i32_0 = arith.constant 0 : i32
    %c0_i32_1 = arith.constant 0 : i32
    return %c0_i32, %c0_i32_0 : i32, i32
  }
  func.func @transform_4(%arg0: i32) -> (i32, i32) {
    %c0_i32 = arith.constant 0 : i32
    %c0_i32_0 = arith.constant 0 : i32
    %c0_i32_1 = arith.constant 0 : i32
    return %c0_i32, %c0_i32_0 : i32, i32
  }
  func.func @transform_5(%arg0: i32) -> (i32, i32) {
    %c0_i32 = arith.constant 0 : i32
    %c0_i32_0 = arith.constant 0 : i32
    %c0_i32_1 = arith.constant 0 : i32
    return %c0_i32, %c0_i32_0 : i32, i32
  }
  func.func @transform_6(%arg0: i32) -> (i32, i32) {
    %c0_i32 = arith.constant 0 : i32
    %c0_i32_0 = arith.constant 0 : i32
    %c0_i32_1 = arith.constant 0 : i32
    return %c0_i32, %c0_i32_0 : i32, i32
  }
  func.func @transform_7(%arg0: i32) -> (i32, i32) {
    %c0_i32 = arith.constant 0 : i32
    %c0_i32_0 = arith.constant 0 : i32
    return %arg0, %c0_i32 : i32, i32
  }
}

</mosaic_0001>

<bundles_post_ra>
// kernel: tpu_custom_call.1
= control target key start
LH: loop header
LB: loop body
LE: loop exit
PB: predicated region body
PF: predicated region fallthrough
CT: control target
= control target key end

     0   :  { %12 = vsyncpa [#allocation3], 0  ;;  %s998_s0 = inlined_call_operand.hbm [shape: f32[8,16], index: 0, kind: input, shape index: {}]   ;;  %s999_s1 = inlined_call_operand.hbm [shape: bf16[16,256], index: 1, kind: input, shape index: {}]   ;;  %s1000_s2 = inlined_call_operand.vmem [shape: f32[1,256], index: 2, kind: input, shape index: {}]   ;;  %s1001_s3 = inlined_call_operand.hbm [shape: bf16[256,256], index: 3, kind: input, shape index: {}]   ;;  %s1002_s4 = inlined_call_operand.vmem [shape: f32[1,256], index: 4, kind: input, shape index: {}]   ;;  %s1003_s5 = inlined_call_operand.hbm [shape: bf16[256,128], index: 5, kind: input, shape index: {}]   ;;  %s1004_s6 = inlined_call_operand.vmem [shape: f32[1,128], index: 6, kind: input, shape index: {}]   ;;  %s1005_s7 = inlined_call_operand.hbm [shape: f32[8,128], index: 7, kind: output, shape index: {}]  }
   0x1   :  { %13 = vsyncpa [#allocation6], 0 }
   0x2   :  { %14 = vsyncpa [#allocation9], 0 }
   0x3   :  { %15 = vsyncpa [#allocation4], 0  ;;  %s873_s24 = smov [#allocation5]   ;;  %s755_s28 = scalar_lea.hbm %s999_s1, 256 }
   0x4   :  { %s31_s25 = sshll.u32 %s873_s24, 4  ;;  %p756_p0 = scmp.ne.s32.totalorder %s999_s1, %s755_s28  ;;  %s32_s25 = int_to_ptr.vmem [resolvable:$true] %s31_s25 }
   0x5   :  { %p759_p1 = scmp.lt.u32.totalorder %s755_s28, %s999_s1 }
   0x7   :  { %p761_p2 = pnand %p759_p1, %p756_p0 }
   0x9   :  { %764 = shalt.err (!%p761_p2)
}
   0xa   :  { %s765_s10 = scalar_lea.vmem %s32_s25, 256  ;;  %p770_p4 = scmp.lt.s32.totalorder %s32_s25, %s32_s25 }
   0xb   :  { %p766_p3 = scmp.ne.s32.totalorder %s32_s25, %s765_s10  ;;  %p771_p5 = scmp.lt.s32.totalorder %s765_s10, %s765_s10 }
   0xd   :  { %p772_p6 = por %p771_p5, %p770_p4 }
   0xf   :  { %p773_p7 = pnand %p772_p6, %p766_p3 }
  0x11   :  { %776 = shalt.err (!%p773_p7)
}
  0x12   :  { %s874_s11 = smov 128   ;;  %s875_s12 = smov 8  }
  0x13   :  { %37 = dma.hbm_to_vmem [thread:$0]  %s999_s1, 256, %s32_s25, [#allocation6], %s874_s11, %s874_s11, %s875_s12  }
  0x14   :  { %s876_s15 = smov [#allocation2]   ;;  %s877_s17 = smov [#allocation7]  }
  0x15   :  { %s22_s16 = sshll.u32 %s876_s15, 4  ;;  %s45_s18 = sshll.u32 %s877_s17, 4  ;;  %s23_s16 = int_to_ptr.vmem [resolvable:$true] %s22_s16  ;;  %s46_s18 = int_to_ptr.vmem [resolvable:$true] %s45_s18 }
  0x16   :  { %s777_s21 = scalar_lea.hbm %s998_s0, 128 }
  0x17   :  { %p778_p8 = scmp.ne.s32.totalorder %s998_s0, %s777_s21  ;;  %p781_p9 = scmp.lt.u32.totalorder %s777_s21, %s998_s0 }
  0x19   :  { %p783_p10 = pnand %p781_p9, %p778_p8 }
  0x1b   :  { %786 = shalt.err (!%p783_p10)
}
  0x1c   :  { %s787_s1 = scalar_lea.vmem %s23_s16, 128  ;;  %p792_p12 = scmp.lt.s32.totalorder %s23_s16, %s23_s16 }
  0x1d   :  { %p788_p11 = scmp.ne.s32.totalorder %s23_s16, %s787_s1  ;;  %p793_p13 = scmp.lt.s32.totalorder %s787_s1, %s787_s1 }
  0x1f   :  { %p794_p0 = por %p793_p13, %p792_p12 }
  0x21   :  { %p795_p1 = pnand %p794_p0, %p788_p11 }
  0x23   :  { %798 = shalt.err (!%p795_p1)
}
  0x24   :  { %25 = dma.hbm_to_vmem [thread:$0]  %s998_s0, 128, %s23_s16, [#allocation3]  }
  0x25   :  { %s799_s30 = scalar_lea.hbm %s1001_s3, 4096 }
  0x26   :  { %p800_p2 = scmp.ne.s32.totalorder %s1001_s3, %s799_s30  ;;  %p803_p3 = scmp.lt.u32.totalorder %s799_s30, %s1001_s3 }
  0x28   :  { %p805_p4 = pnand %p803_p3, %p800_p2 }
  0x2a   :  { %808 = shalt.err (!%p805_p4)
}
  0x2b   :  { %s809_s14 = scalar_lea.vmem %s46_s18, 4096  ;;  %p814_p6 = scmp.lt.s32.totalorder %s46_s18, %s46_s18 }
  0x2c   :  { %p810_p5 = scmp.ne.s32.totalorder %s46_s18, %s809_s14  ;;  %p815_p7 = scmp.lt.s32.totalorder %s809_s14, %s809_s14 }
  0x2e   :  { %p816_p8 = por %p815_p7, %p814_p6 }
  0x30   :  { %p817_p9 = pnand %p816_p8, %p810_p5 }
  0x32   :  { %820 = shalt.err (!%p817_p9)
}
  0x33   :  { %51 = dma.hbm_to_vmem [thread:$0]  %s1001_s3, 4096, %s46_s18, [#allocation6], %s874_s11, %s874_s11, %s875_s12  }
  0x34   :  { %s878_s16 = smov [#allocation8]   ;;  %s821_s21 = scalar_lea.hbm %s1003_s5, 2048 }
  0x35   :  { %s59_s17 = sshll.u32 %s878_s16, 4  ;;  %p822_p10 = scmp.ne.s32.totalorder %s1003_s5, %s821_s21  ;;  %s60_s17 = int_to_ptr.vmem [resolvable:$true] %s59_s17 }
  0x36   :  { %p825_p11 = scmp.lt.u32.totalorder %s821_s21, %s1003_s5 }
  0x38   :  { %p827_p12 = pnand %p825_p11, %p822_p10 }
  0x3a   :  { %830 = shalt.err (!%p827_p12)
}
  0x3b   :  { %s831_s1 = scalar_lea.vmem %s60_s17, 2048  ;;  %p836_p0 = scmp.lt.s32.totalorder %s60_s17, %s60_s17 }
  0x3c   :  { %p832_p13 = scmp.ne.s32.totalorder %s60_s17, %s831_s1  ;;  %p837_p1 = scmp.lt.s32.totalorder %s831_s1, %s831_s1 }
  0x3e   :  { %p838_p2 = por %p837_p1, %p836_p0 }
  0x40   :  { %p839_p3 = pnand %p838_p2, %p832_p13 }
  0x42   :  { %842 = shalt.err (!%p839_p3)
}
  0x43   :  { %s879_s3 = smov 64   ;;  %s880_s11 = smov 4  }
  0x44   :  { %65 = dma.hbm_to_vmem [thread:$0]  %s1003_s5, 2048, %s60_s17, [#allocation9], %s879_s3, %s879_s3, %s880_s11  }
  0x45   :  { %865 = dma.done.wait [#allocation3], 128  }
  0x46   :  { %866 = vsyncadd [#allocation3], 4294967168 }
  0x47   :  { %867 = dma.done.wait [#allocation6], 4352  }
  0x48   :  { %868 = vsyncadd [#allocation6], 4294962944 }
  0x49   :  { %869 = dma.done.wait [#allocation9], 2048  }
  0x4a   :  { %870 = vsyncadd [#allocation9], 4294965248  ;;  %v881_v0 = vmov 0   ;;  %v688_v1 = vld [vmem:[#allocation5 + $0x4] ss:$8 sps:$4 sm:$0xff]   ;;  %v81_v3 = vld [vmem:[#allocation2] sm:$0xff]  ;;  %v87_v49 = vlaneseq }
  0x4b   :  { %143 = vmatprep.mubr.bf16.mxu0 %v881_v0  ;;  %v690_v2 = vld [vmem:[#allocation5] ss:$8 sps:$4 sm:$0xff]   ;;  %111 = vmatprep.subr.bf16.mxu0 %v688_v1  ;;  %v82_v4 = vpack.c.bf16 %v81_v3, %v81_v3  ;;  %v691_v5 = vld [vmem:[#allocation7 + $0x4] ss:$8 sps:$4 sm:$0xff]   ;;  %v693_v6 = vld [vmem:[#allocation7] ss:$8 sps:$4 sm:$0xff]  }
  0x4c   :  { %112 = vmatpush1.bf16.msra.mxu0 %v690_v2  ;;  %vm107_vm0 = vcmask 130048   ;;  %v694_v7 = vld [vmem:[#allocation7 + $0x14] ss:$8 sps:$4 sm:$0xff]   ;;  %360 = vmatprep.subr.bf16.mxu1 %v691_v5  ;;  %v696_v8 = vld [vmem:[#allocation7 + $0x10] ss:$8 sps:$4 sm:$0xff]   ;;  %v739_v37 = vld [vmem:[#allocation8 + $0x40] sm:$0xff]  }
  0x4d   :  { %361 = vmatpush1.bf16.msra.mxu1 %v693_v6  ;;  %v697_v9 = vld [vmem:[#allocation7 + $0x24] ss:$8 sps:$4 sm:$0xff]   ;;  %v699_v10 = vld [vmem:[#allocation7 + $0x20] ss:$8 sps:$4 sm:$0xff]   ;;  %v700_v11 = vld [vmem:[#allocation7 + $0x34] ss:$8 sps:$4 sm:$0xff]   ;;  %656 = vmatprep.subr.bf16.mxu0 %v739_v37 }
  0x4e   :  { %362 = vmatprep.subr.bf16.mxu1 %v694_v7  ;;  %v702_v12 = vld [vmem:[#allocation7 + $0x30] ss:$8 sps:$4 sm:$0xff]   ;;  %v703_v13 = vld [vmem:[#allocation7 + $0x44] ss:$8 sps:$4 sm:$0xff]   ;;  %v705_v14 = vld [vmem:[#allocation7 + $0x40] ss:$8 sps:$4 sm:$0xff]  }
  0x4f   :  { %606 = vmatmul.mubr.msk.bf16.vlgmr.msra.gmra.mrb[0].mxu0 %vm107_vm0, %v82_v4  ;;  %v706_v15 = vld [vmem:[#allocation7 + $0x54] ss:$8 sps:$4 sm:$0xff]   ;;  %v708_v16 = vld [vmem:[#allocation7 + $0x50] ss:$8 sps:$4 sm:$0xff]   ;;  %v709_v17 = vld [vmem:[#allocation7 + $0x64] ss:$8 sps:$4 sm:$0xff]  }
  0x50   :  { %v711_v18 = vld [vmem:[#allocation7 + $0x60] ss:$8 sps:$4 sm:$0xff]   ;;  %v712_v19 = vld [vmem:[#allocation7 + $0x74] ss:$8 sps:$4 sm:$0xff]   ;;  %v714_v20 = vld [vmem:[#allocation7 + $0x70] ss:$8 sps:$4 sm:$0xff]  }
  0x51   :  { %363 = vmatpush1.bf16.msra.mxu1 %v696_v8  ;;  %v715_v21 = vld [vmem:[#allocation7 + $0x84] ss:$8 sps:$4 sm:$0xff]   ;;  %v717_v22 = vld [vmem:[#allocation7 + $0x80] ss:$8 sps:$4 sm:$0xff]   ;;  %v718_v23 = vld [vmem:[#allocation7 + $0x94] ss:$8 sps:$4 sm:$0xff]  }
  0x52   :  { %364 = vmatprep.subr.bf16.mxu1 %v697_v9  ;;  %v720_v24 = vld [vmem:[#allocation7 + $0x90] ss:$8 sps:$4 sm:$0xff]   ;;  %v721_v25 = vld [vmem:[#allocation7 + $0xa4] ss:$8 sps:$4 sm:$0xff]   ;;  %v723_v26 = vld [vmem:[#allocation7 + $0xa0] ss:$8 sps:$4 sm:$0xff]  }
  0x53   :  { %v724_v27 = vld [vmem:[#allocation7 + $0xb4] ss:$8 sps:$4 sm:$0xff]   ;;  %v726_v28 = vld [vmem:[#allocation7 + $0xb0] ss:$8 sps:$4 sm:$0xff]   ;;  %v727_v29 = vld [vmem:[#allocation7 + $0xc4] ss:$8 sps:$4 sm:$0xff]  }
  0x54   :  { %v729_v30 = vld [vmem:[#allocation7 + $0xc0] ss:$8 sps:$4 sm:$0xff]   ;;  %v730_v31 = vld [vmem:[#allocation7 + $0xd4] ss:$8 sps:$4 sm:$0xff]   ;;  %v732_v32 = vld [vmem:[#allocation7 + $0xd0] ss:$8 sps:$4 sm:$0xff]  }
  0x55   :  { %365 = vmatpush1.bf16.msra.mxu1 %v699_v10  ;;  %v733_v33 = vld [vmem:[#allocation7 + $0xe4] ss:$8 sps:$4 sm:$0xff]   ;;  %v735_v34 = vld [vmem:[#allocation7 + $0xe0] ss:$8 sps:$4 sm:$0xff]   ;;  %v736_v35 = vld [vmem:[#allocation7 + $0xf4] ss:$8 sps:$4 sm:$0xff]  }
  0x56   :  { %366 = vmatprep.subr.bf16.mxu1 %v700_v11  ;;  %v738_v36 = vld [vmem:[#allocation7 + $0xf0] ss:$8 sps:$4 sm:$0xff]   ;;  %v740_v38 = vld [vmem:[#allocation8] sm:$0xff]   ;;  %v741_v39 = vld [vmem:[#allocation8 + $0x48] sm:$0xff]   ;;  %v88_v50 = vshrl.u32 %v87_v49, 7 }
  0x57   :  { %657 = vmatpush3.bf16.msra.mxu0 %v740_v38  ;;  %v742_v40 = vld [vmem:[#allocation8 + $0x8] sm:$0xff]   ;;  %v743_v41 = vld [vmem:[#allocation8 + $0x50] sm:$0xff]   ;;  %v745_v43 = vld [vmem:[#allocation8 + $0x58] sm:$0xff]  }
  0x58   :  { %658 = vmatprep.subr.bf16.mxu0 %v741_v39  ;;  %v744_v42 = vld [vmem:[#allocation8 + $0x10] sm:$0xff]   ;;  %v746_v44 = vld [vmem:[#allocation8 + $0x18] sm:$0xff]   ;;  %v747_v45 = vld [vmem:[#allocation8 + $0x60] sm:$0xff]   ;;  %v89_v51 = vsub.s32 0, %v88_v50  ;;  %v93_v53 = vsub.s32 1, %v88_v50 }
  0x59   :  { %367 = vmatpush1.bf16.msra.mxu1 %v702_v12  ;;  %v748_v46 = vld [vmem:[#allocation8 + $0x20] sm:$0xff]   ;;  %v749_v47 = vld [vmem:[#allocation8 + $0x68] sm:$0xff]   ;;  %v751_v2 = vld [vmem:[#allocation8 + $0x70] sm:$0xff]  }
  0x5a   :  { %368 = vmatprep.subr.bf16.mxu1 %v703_v13  ;;  %v750_v48 = vld [vmem:[#allocation8 + $0x28] sm:$0xff]   ;;  %v752_v3 = vld [vmem:[#allocation8 + $0x30] sm:$0xff]   ;;  %v753_v4 = vld [vmem:[#allocation8 + $0x78] sm:$0xff]  }
  0x5b   :  { %659 = vmatpush3.bf16.msra.mxu0 %v742_v40  ;;  %v85_v52 = vld [vmem:[%s1000_s2] sm:$0x3]  ;;  %v754_v5 = vld [vmem:[#allocation8 + $0x38] sm:$0xff]  }
  0x5c   :  { %660 = vmatprep.subr.bf16.mxu0 %v743_v41  ;;  %v90_v54 = vrot.slane %v85_v52, %v89_v51  ;;  %v94_v55 = vrot.slane %v85_v52, %v93_v53  ;;  %v188_v6 = vld [vmem:[%s1002_s4] sm:$0x3]  ;;  %s882_s4 = smov [#allocation10]  }
  0x5d   :  { %369 = vmatpush1.bf16.msra.mxu1 %v705_v14  ;;  %v193_v7 = vrot.slane %v188_v6, %v89_v51  ;;  %v197_v8 = vrot.slane %v188_v6, %v93_v53  ;;  %s593_s30 = sshll.u32 %s882_s4, 4  ;;  %s594_s30 = int_to_ptr.vmem [resolvable:$true] %s593_s30 }
  0x5e   :  { %370 = vmatprep.subr.bf16.mxu1 %v706_v15  ;;  %s843_s8 = scalar_lea.vmem %s594_s30, 128  ;;  %p848_p5 = scmp.lt.s32.totalorder %s594_s30, %s594_s30 }
  0x5f   :  { %661 = vmatpush3.bf16.msra.mxu0 %v744_v42  ;;  %p844_p4 = scmp.ne.s32.totalorder %s594_s30, %s843_s8  ;;  %p849_p6 = scmp.lt.s32.totalorder %s843_s8, %s843_s8 }
  0x60   :  { %662 = vmatprep.subr.bf16.mxu0 %v745_v43 }
  0x61   :  { %371 = vmatpush1.bf16.msra.mxu1 %v708_v16  ;;  %p850_p7 = por %p849_p6, %p848_p5 }
  0x62   :  { %372 = vmatprep.subr.bf16.mxu1 %v709_v17 }
  0x63   :  { %663 = vmatpush3.bf16.msra.mxu0 %v746_v44  ;;  %p851_p8 = pnand %p850_p7, %p844_p4 }
  0x64   :  { %664 = vmatprep.subr.bf16.mxu0 %v747_v45 }
  0x65   :  { %373 = vmatpush1.bf16.msra.mxu1 %v711_v18 }
  0x66   :  { %374 = vmatprep.subr.bf16.mxu1 %v712_v19 }
  0x67   :  { %665 = vmatpush3.bf16.msra.mxu0 %v748_v46 }
  0x68   :  { %666 = vmatprep.subr.bf16.mxu0 %v749_v47 }
  0x69   :  { %375 = vmatpush1.bf16.msra.mxu1 %v714_v20  ;;  %v639_v20 = vld [vmem:[%s1004_s6] ss:$0 sm:$0xff] }
  0x6a   :  { %376 = vmatprep.subr.bf16.mxu1 %v715_v21 }
  0x6b   :  { %667 = vmatpush3.bf16.msra.mxu0 %v750_v48 }
  0x6c   :  { %668 = vmatprep.subr.bf16.mxu0 %v751_v2 }
  0x6d   :  { %377 = vmatpush1.bf16.msra.mxu1 %v717_v22 }
  0x6e   :  { %378 = vmatprep.subr.bf16.mxu1 %v718_v23 }
  0x6f   :  { %669 = vmatpush3.bf16.msra.mxu0 %v752_v3 }
  0x70   :  { %670 = vmatprep.subr.bf16.mxu0 %v753_v4 }
  0x71   :  { %379 = vmatpush1.bf16.msra.mxu1 %v720_v24 }
  0x72   :  { %380 = vmatprep.subr.bf16.mxu1 %v721_v25  ;;  %v581_v25 = vand.u32 127, %v87_v49 }
  0x73   :  { %671 = vmatpush3.bf16.msra.mxu0 %v754_v5 }
  0x74   :  { %vm582_vm1 = vcmp.ge.s32.totalorder %v581_v25, 4 }
  0x75   :  { %381 = vmatpush1.bf16.msra.mxu1 %v723_v26 }
  0x76   :  { %382 = vmatprep.subr.bf16.mxu1 %v724_v27 }
  0x79   :  { %383 = vmatpush1.bf16.msra.mxu1 %v726_v28 }
  0x7a   :  { %384 = vmatprep.subr.bf16.mxu1 %v727_v29 }
  0x7d   :  { %385 = vmatpush1.bf16.msra.mxu1 %v729_v30 }
  0x7e   :  { %386 = vmatprep.subr.bf16.mxu1 %v730_v31 }
  0x81   :  { %387 = vmatpush1.bf16.msra.mxu1 %v732_v32 }
  0x82   :  { %388 = vmatprep.subr.bf16.mxu1 %v733_v33 }
  0x85   :  { %389 = vmatpush1.bf16.msra.mxu1 %v735_v34 }
  0x86   :  { %390 = vmatprep.subr.bf16.mxu1 %v736_v35 }
  0x89   :  { %391 = vmatpush1.bf16.msra.mxu1 %v738_v36 }
 0x122   :  { %v145_v56 = vpop.f32.mrb[0].mxu0 }
 0x123   :  { %v146_v57 = vadd.f32 %v145_v56, %v90_v54  ;;  %v147_v58 = vpop.f32.mrb[1].mxu0 }
 0x124   :  { %v148_v59 = vadd.f32 %v147_v58, %v94_v55  ;;  %v149_v60 = vpop.f32.mrb[2].mxu0 }
 0x125   :  { %v152_v61 = vmax.f32 %v146_v57, 0.0  ;;  %v150_v62 = vpop.f32.mrb[3].mxu0 }
 0x126   :  { %v153_v63 = vmax.f32 %v148_v59, 0.0 }
 0x127   :  { %v154_v1 = vpack.c.bf16 %v152_v61, %v152_v61 }
 0x128   :  { %v155_v0 = vpack.c.bf16 %v153_v63, %v153_v63 }
 0x12a   :  { %392 = vmatprep.mubr.bf16.mxu1 %v155_v0 }
 0x12b   :  { %393 = vmatmul.mubr.bf16.vlgmr.msra.gmra.mrb[0].mxu1 %v154_v1 }
 0x1fe   :  { %v394_v9 = vpop.f32.mrb[0].mxu1 }
 0x1ff   :  { %v395_v10 = vadd.f32 %v394_v9, %v193_v7  ;;  %v396_v11 = vpop.f32.mrb[1].mxu1 }
 0x200   :  { %v397_v12 = vadd.f32 %v396_v11, %v197_v8  ;;  %v398_v13 = vpop.f32.mrb[2].mxu1 }
 0x201   :  { %v401_v14 = vmax.f32 %v395_v10, 0.0  ;;  %v399_v15 = vpop.f32.mrb[3].mxu1 }
 0x202   :  { %v402_v16 = vmax.f32 %v397_v12, 0.0 }
 0x203   :  { %v403_v18 = vpack.c.bf16 %v401_v14, %v401_v14 }
 0x204   :  { %v404_v17 = vpack.c.bf16 %v402_v16, %v402_v16 }
 0x206   :  { %572 = vmatprep.mubr.bf16.mxu0 %v404_v17 }
 0x207   :  { %573 = vmatmul.mubr.bf16.vlgmr.msra.gmra.mrb[4].mxu0 %v403_v18 }
 0x2da   :  { %v672_v19 = vpop.f32.mrb[4].mxu0 }
 0x2db   :  { %v673_v21 = vpop.f32.mrb[5].mxu0 }
 0x2dc   :  { %v674_v22 = vadd.f32 %v673_v21, %v672_v19  ;;  %v675_v23 = vpop.f32.mrb[6].mxu0 }
 0x2dd   :  { %v676_v24 = vpop.f32.mrb[7].mxu0 }
 0x2de   :  { %v575_v26 = vadd.f32 %v674_v22, %v639_v20 }
 0x2e0   :  { %v583_v27 = vmax.f32 %v575_v26, -20.0 }
 0x2e2   :  { %v584_v28 = vmin.f32 %v583_v27, 2.0 }
 0x2e4   :  { %v585_v29 = vsel %vm582_vm1, %v584_v28, %v575_v26 }
 0x2e5   :  { %586 = vst [vmem:[#allocation10] sm:$0xff] %v585_v29 }
 0x2e6   :  { %854 = shalt.err (!%p851_p8)
}
 0x2e7   :  { %s855_s10 = scalar_lea.hbm %s1005_s7, 128 }
 0x2e8   :  { %p856_p9 = scmp.ne.s32.totalorder %s1005_s7, %s855_s10  ;;  %p859_p10 = scmp.lt.u32.totalorder %s855_s10, %s1005_s7 }
 0x2ea   :  { %p861_p11 = pnand %p859_p10, %p856_p9 }
 0x2ec   :  { %864 = shalt.err (!%p861_p11)
}
 0x2ed   :  { %596 = dma.vmem_to_hbm [thread:$0]  %s594_s30, 128, %s1005_s7, [#allocation4]  }
 0x2ee   :  { %871 = dma.done.wait [#allocation4], 128  }
 0x2ef   :  { %872 = vsyncadd [#allocation4], 4294967168 }
 0x2f0   :  { %600 = vsyncpa [#allocation3], 1 }
 0x2f1   :  { %601 = vsyncpa [#allocation6], 1 }
 0x2f2   :  { %602 = vsyncpa [#allocation9], 1 }
 0x2f3   :  { %603 = vsyncpa [#allocation4], 1 }

</bundles_post_ra>
